<compile_context>
chip_gen: v5e
topology: v5e:2x2
jax: 0.10.0
libtpu: 0.0.40
codegen_flags: <defaults>
</compile_context>

<pallas_src>
import math
import functools

import jax
import jax.numpy as jnp
from jax.experimental import pallas as pl
from jax.experimental.pallas import tpu as pltpu


def _round_up(a, b):
    return (a + b - 1) // b * b


def _round_down(a, b):
    return a // b * b


@functools.lru_cache(maxsize=1)
def _vmem_capacity_bytes():
    """Physical VMEM per TensorCore; conservative fallback (v7x class, 64 MiB)."""
    try:
        info = pltpu.get_tpu_info()
        cap = getattr(info, "vmem_capacity_bytes", None)
        if cap:
            return int(cap)
    except Exception:
        pass
    return 64 * 1024 * 1024


# ----------------------------- kernel bodies --------------------------------


def _linear_kernel_single(x_ref, w_ref, b_ref, o_ref):
    # Whole K in one tile: pure store, no accumulator RMW, no branches.
    o_ref[...] = (
        jnp.dot(x_ref[...], w_ref[...], preferred_element_type=jnp.float32)
        + b_ref[...]
    ).astype(o_ref.dtype)


def _linear_kernel_f32(x_ref, w_ref, b_ref, o_ref):
    # f32 output: the output block (constant index across the K axis) stays
    # VMEM-resident and doubles as the accumulator -- no scratch, no copy.
    @pl.when(pl.program_id(2) == 0)
    def _():
        o_ref[...] = jnp.broadcast_to(b_ref[...], o_ref.shape)

    o_ref[...] += jnp.dot(
        x_ref[...], w_ref[...], preferred_element_type=jnp.float32
    )


def _linear_kernel_acc(x_ref, w_ref, b_ref, o_ref, acc_ref):
    k = pl.program_id(2)

    @pl.when(k == 0)
    def _():
        # Bias folded into the accumulator init (no epilogue VPU add).
        acc_ref[...] = jnp.broadcast_to(b_ref[...], acc_ref.shape)

    acc_ref[...] += jnp.dot(
        x_ref[...], w_ref[...], preferred_element_type=jnp.float32
    )

    @pl.when(k == pl.num_programs(2) - 1)
    def _():
        o_ref[...] = acc_ref[...].astype(o_ref.dtype)


# ----------------------------- tile selection --------------------------------


def _pick_tiles(M, K, N, in_bytes, out_bytes, vmem_cap, tm, tn, tk):
    """Padding-minimizing, VMEM-budgeted, dtype/generation-aware tile sizes."""
    is_small_vmem = vmem_cap <= 80 * 1024 * 1024          # v7x-class (64 MiB/TC)
    budget = (22 if is_small_vmem else 48) * 1024 * 1024   # working-set budget
    tn_cap = 512 if is_small_vmem else 1024

    tm_auto, tn_auto = tm is None, tn is None

    # tm: whole (padded) batch when small; otherwise minimize M padding.
    if tm is None:
        if M <= 256:
            tm = _round_up(max(M, 1), 8)
        else:
            tm = min((256, 128), key=lambda t: (_round_up(M, t), -t))

    # tn: lane-dense (multiple of 128), minimize N padding, capped per chip gen.
    if tn is None:
        n128 = _round_up(N, 128)
        if n128 <= tn_cap:
            tn = n128
        else:
            tn = min(range(128, tn_cap + 1, 128),
                     key=lambda t: (_round_up(n128, t), -t))

    # v7x megacore: ensure a parallel axis has >= 2 blocks so both TCs work.
    if is_small_vmem:
        m_p, n_p = _round_up(M, tm), _round_up(N, tn)
        if m_p // tm == 1 and n_p // tn == 1:
            if tn_auto and n_p % 256 == 0:
                tn = n_p // 2          # split N: weight partitioned across TCs
            elif tm_auto and m_p >= 256 and m_p % 16 == 0:
                tm = m_p // 2

    # tk: as deep as the budget allows (dtype-aware); full K => single-step path.
    if tk is None:
        fixed = 2 * tm * tn * max(out_bytes, 4) + tm * tn * 4 + 2 * tn * 4
        per_k = 2 * (tm + tn) * in_bytes               # double-buffered x & w
        tk_max = max(128, _round_down(max(budget - fixed, 0) // per_k, 128))
        k128 = _round_up(K, 128)
        if k128 <= tk_max:
            tk = k128                                   # single K step
        else:
            tk = min(range(128, tk_max + 1, 128),
                     key=lambda t: (_round_up(k128, t), -t))

    return tm, tn, tk


# ----------------------------- public wrapper --------------------------------


@functools.partial(jax.jit, static_argnames=("tm", "tn", "tk"))
def new_linear(x, weight, bias=None, *, tm=None, tn=None, tk=None):
    """y = x @ weight + bias  (== F.linear(x, weight.T, bias)) as a Pallas kernel."""
    *lead, K = x.shape
    K2, N = weight.shape
    assert K == K2, "in_features mismatch"
    M = 1
    for d in lead:
        M *= d
    x2 = x.reshape(M, K)
    out_dtype = x.dtype
    in_bytes = jnp.dtype(x.dtype).itemsize
    out_bytes = jnp.dtype(out_dtype).itemsize

    vmem_cap = _vmem_capacity_bytes()
    is_small_vmem = vmem_cap <= 80 * 1024 * 1024
    tm, tn, tk = _pick_tiles(M, K, N, in_bytes, out_bytes, vmem_cap, tm, tn, tk)

    M_p = _round_up(M, tm)
    N_p = _round_up(N, tn)
    K_p = _round_up(K, tk)

    # Bias is handed to the kernel in f32 so accumulator math stays f32 on
    # every TPU generation (v5e VPU has no bf16).
    if bias is None:
        bias_f32 = jnp.zeros((N,), dtype=jnp.float32)
    else:
        bias_f32 = bias.astype(jnp.float32)

    # Zero padding is exact for the matmul; padded N columns are sliced off
    # below.  For a fixed model, pre-pad the weight once outside the jitted
    # step (or use 128-multiple feature sizes) to avoid this per-call copy.
    if (M_p, K_p) != (M, K):
        x2 = jnp.pad(x2, ((0, M_p - M), (0, K_p - K)))
    w2 = weight
    if (K_p, N_p) != (K, N):
        w2 = jnp.pad(w2, ((0, K_p - K), (0, N_p - N)))
    if N_p != N:
        bias_f32 = jnp.pad(bias_f32, (0, N_p - N))
    bias2d = bias_f32.reshape(1, N_p)

    cost = pl.CostEstimate(
        flops=2 * M_p * K_p * N_p,
        transcendentals=0,
        bytes_accessed=(M_p * K_p + K_p * N_p) * in_bytes + M_p * N_p * out_bytes,
    )
    vmem_limit = (32 if is_small_vmem else 64) * 1024 * 1024

    nk = K_p // tk
    if nk == 1:
        # ---- fast path: no K reduction axis, pure store ---------------------
        out_p = pl.pallas_call(
            _linear_kernel_single,
            out_shape=jax.ShapeDtypeStruct((M_p, N_p), out_dtype),
            grid_spec=pltpu.PrefetchScalarGridSpec(
                num_scalar_prefetch=0,
                grid=(M_p // tm, N_p // tn),
                in_specs=[
                    pl.BlockSpec((tm, K_p), lambda i, j: (i, 0)),   # x tile
                    pl.BlockSpec((K_p, tn), lambda i, j: (0, j)),   # weight tile
                    pl.BlockSpec((1, tn), lambda i, j: (0, j)),     # bias (f32)
                ],
                out_specs=pl.BlockSpec((tm, tn), lambda i, j: (i, j)),
            ),
            compiler_params=pltpu.CompilerParams(
                dimension_semantics=("parallel", "parallel"),
                vmem_limit_bytes=vmem_limit,
            ),
            cost_estimate=cost,
        )(x2, w2, bias2d)
    else:
        # ---- multi-step K reduction (very large in_features only) -----------
        acc_in_output = out_dtype == jnp.float32
        kernel = _linear_kernel_f32 if acc_in_output else _linear_kernel_acc
        scratch = [] if acc_in_output else [pltpu.VMEM((tm, tn), jnp.float32)]
        out_p = pl.pallas_call(
            kernel,
            out_shape=jax.ShapeDtypeStruct((M_p, N_p), out_dtype),
            grid_spec=pltpu.PrefetchScalarGridSpec(
                num_scalar_prefetch=0,
                grid=(M_p // tm, N_p // tn, nk),
                in_specs=[
                    pl.BlockSpec((tm, tk), lambda i, j, k: (i, k)),   # x tile
                    pl.BlockSpec((tk, tn), lambda i, j, k: (k, j)),   # weight tile
                    pl.BlockSpec((1, tn), lambda i, j, k: (0, j)),    # bias (f32)
                ],
                out_specs=pl.BlockSpec((tm, tn), lambda i, j, k: (i, j)),
                scratch_shapes=scratch,
            ),
            compiler_params=pltpu.CompilerParams(
                dimension_semantics=("parallel", "parallel", "arbitrary"),
                vmem_limit_bytes=vmem_limit,
            ),
            cost_estimate=cost,
        )(x2, w2, bias2d)

    out = out_p[:M, :N]
    return out.reshape(*lead, N)


def init_params(key, in_features, out_features, dtype=jnp.float32):
    """Deterministic init mirroring newLinear.reset_parameters().

    kaiming_uniform_(weight, a=sqrt(5)) on a (in_features, out_features) tensor:
      fan_in = out_features (PyTorch fan_in is dim-1 for a 2-D tensor),
      gain = sqrt(2 / (1 + a^2)) = sqrt(1/3), bound = gain * sqrt(3 / fan_in).
    bias ~ U(-1/sqrt(fan_in), 1/sqrt(fan_in)) with the same fan_in.
    """
    kw, kb = jax.random.split(key)
    fan_in = out_features  # dim-1 of the (in, out) weight tensor, per PyTorch
    gain = math.sqrt(2.0 / (1.0 + 5.0))
    w_bound = gain * math.sqrt(3.0 / fan_in)
    weight = jax.random.uniform(
        kw, (in_features, out_features), dtype, minval=-w_bound, maxval=w_bound
    )
    b_bound = 1.0 / math.sqrt(fan_in)
    bias = jax.random.uniform(
        kb, (out_features,), dtype, minval=-b_bound, maxval=b_bound
    )
    return weight, bias


if __name__ == "__main__":
    key = jax.random.PRNGKey(0)
    k1, k2, k3, k4, k5 = jax.random.split(key, 5)

    # --- check 1: small, non-aligned shapes -> padding + single-K fast path --
    batch, in_features, out_features = 8, 48, 80
    x = jax.random.normal(k1, (batch, in_features), jnp.float32)
    weight, bias = init_params(k2, in_features, out_features)
    y = jax.block_until_ready(new_linear(x, weight, bias))
    y_ref = x @ weight + bias
    assert y.shape == (batch, out_features)
    assert jnp.allclose(y, y_ref, atol=1e-4, rtol=1e-4), "mismatch (small/fast path)"

    # --- check 2: forced tiles -> multi-step K, f32 resident-output acc ------
    m2, kdim2, n2 = 256, 384, 256
    x2 = jax.random.normal(k3, (m2, kdim2), jnp.float32)
    w2, b2 = init_params(k4, kdim2, n2)
    y2 = jax.block_until_ready(new_linear(x2, w2, b2, tm=128, tn=128, tk=128))
    y2_ref = x2 @ w2 + b2
    assert jnp.allclose(y2, y2_ref, atol=1e-3, rtol=1e-3), "mismatch (tiled f32)"

    # --- check 3: bf16 with forced small tk -> scratch-accumulator kernel ----
    xb = jax.random.normal(k5, (32, 256), jnp.float32).astype(jnp.bfloat16)
    wb = w2[:256, :128].astype(jnp.bfloat16)
    bb = b2[:128].astype(jnp.bfloat16)
    yb = jax.block_until_ready(new_linear(xb, wb, bb, tk=128))
    yb_ref = (xb.astype(jnp.float32) @ wb.astype(jnp.float32)
              + bb.astype(jnp.float32)).astype(jnp.bfloat16)
    assert jnp.allclose(yb.astype(jnp.float32), yb_ref.astype(jnp.float32),
                        atol=5e-2, rtol=5e-2), "mismatch (bf16 multi-step)"

    # --- check 4: bias=None path ---------------------------------------------
    yn = jax.block_until_ready(new_linear(x, weight, None))
    assert jnp.allclose(yn, x @ weight, atol=1e-4, rtol=1e-4), "mismatch (no bias)"

    print("KERNEL_OK")
</pallas_src>

<mosaic_0001>
module attributes {stable_mosaic.version = 11 : i64} {
  func.func @_linear_kernel_single(%arg0: i32, %arg1: i32, %arg2: memref<8x128xf32, #tpu.memory_space<vmem>>, %arg3: memref<128x128xf32, #tpu.memory_space<vmem>>, %arg4: memref<1x128xf32, #tpu.memory_space<vmem>>, %arg5: memref<8x128xf32, #tpu.memory_space<vmem>>) attributes {dimension_semantics = [#tpu.dimension_semantics<parallel>, #tpu.dimension_semantics<parallel>], iteration_bounds = array<i64: 1, 1>, scalar_prefetch = 0 : i64, scratch_operands = 0 : i64, tpu.core_type = #tpu.core_type<tc>, window_params = [{transform_indices = @transform_0, window_bounds = array<i64: 8, 128>}, {transform_indices = @transform_1, window_bounds = array<i64: 128, 128>}, {transform_indices = @transform_2, window_bounds = array<i64: 1, 128>}, {transform_indices = @transform_3, window_bounds = array<i64: 8, 128>}]} {
    %c0 = arith.constant 0 : index
    %c0_0 = arith.constant 0 : index
    %0 = vector.load %arg2[%c0, %c0_0] : memref<8x128xf32, #tpu.memory_space<vmem>>, vector<8x128xf32>
    %c0_1 = arith.constant 0 : index
    %c0_2 = arith.constant 0 : index
    %1 = vector.load %arg3[%c0_1, %c0_2] : memref<128x128xf32, #tpu.memory_space<vmem>>, vector<128x128xf32>
    %cst = arith.constant dense<0.000000e+00> : vector<8x128xf32>
    %2 = tpu.matmul %0, %1, %cst {dimension_numbers = #tpu.dot_dimension_numbers<[1], [0], [0], [1], [0, 0, 1, 1], [], []>} : vector<8x128xf32>, vector<128x128xf32>, vector<8x128xf32> -> vector<8x128xf32>
    %c0_3 = arith.constant 0 : index
    %c0_4 = arith.constant 0 : index
    %3 = vector.load %arg4[%c0_3, %c0_4] : memref<1x128xf32, #tpu.memory_space<vmem>>, vector<1x128xf32>
    %4 = vector.broadcast %3 : vector<1x128xf32> to vector<8x128xf32>
    %5 = arith.addf %2, %4 : vector<8x128xf32>
    %c0_5 = arith.constant 0 : index
    %c0_6 = arith.constant 0 : index
    %6 = vector.load %arg5[%c0_5, %c0_6] : memref<8x128xf32, #tpu.memory_space<vmem>>, vector<8x128xf32>
    tpu.vector_store %arg5[%c0_5, %c0_6], %5 {strides = array<i32>} : memref<8x128xf32, #tpu.memory_space<vmem>>, vector<8x128xf32>,
    return
  }
  func.func @transform_0(%arg0: i32, %arg1: i32) -> (i32, i32) {
    %c0_i32 = arith.constant 0 : i32
    %c0_i32_0 = arith.constant 0 : i32
    return %arg0, %c0_i32 : i32, i32
  }
  func.func @transform_1(%arg0: i32, %arg1: i32) -> (i32, i32) {
    %c0_i32 = arith.constant 0 : i32
    %c0_i32_0 = arith.constant 0 : i32
    return %c0_i32, %arg1 : i32, i32
  }
  func.func @transform_2(%arg0: i32, %arg1: i32) -> (i32, i32) {
    %c0_i32 = arith.constant 0 : i32
    %c0_i32_0 = arith.constant 0 : i32
    return %c0_i32, %arg1 : i32, i32
  }
  func.func @transform_3(%arg0: i32, %arg1: i32) -> (i32, i32) {
    %c0_i32 = arith.constant 0 : i32
    return %arg0, %arg1 : i32, i32
  }
}

</mosaic_0001>

<bundles_post_ra>
// kernel: new_linear.1
= control target key start
LH: loop header
LB: loop body
LE: loop exit
PB: predicated region body
PF: predicated region fallthrough
CT: control target
= control target key end

     0   :  { %s179_s0 = inlined_call_operand.vmem [shape: f32[8,128], index: 0, kind: input, shape index: {}]   ;;  %s180_s1 = inlined_call_operand.vmem [shape: f32[128,128], index: 1, kind: input, shape index: {}]   ;;  %s181_s2 = inlined_call_operand.vmem [shape: f32[1,128], index: 2, kind: input, shape index: {}]   ;;  %s182_s3 = inlined_call_operand.hbm [shape: f32[8,128], index: 3, kind: output, shape index: {}]  }
   0x1   :  { %v31_v0 = vld [vmem:[%s180_s1 + $0x78] sm:$0xff]  ;;  %v30_v1 = vld [vmem:[%s180_s1 + $0x70] sm:$0xff]  ;;  %v29_v2 = vld [vmem:[%s180_s1 + $0x68] sm:$0xff] }
   0x2   :  { %36 = vmatpush.msra.mxu0 %v31_v0  ;;  %v28_v3 = vld [vmem:[%s180_s1 + $0x60] sm:$0xff]  ;;  %v27_v4 = vld [vmem:[%s180_s1 + $0x58] sm:$0xff] }
   0x4   :  { %37 = vmatpush.msra.mxu0 %v30_v1 }
   0x6   :  { %38 = vmatpush.msra.mxu0 %v29_v2 }
   0x7   :  { %8 = vsyncpa [#allocation3], 0  ;;  %v26_v5 = vld [vmem:[%s180_s1 + $0x50] sm:$0xff]  ;;  %v25_v6 = vld [vmem:[%s180_s1 + $0x48] sm:$0xff]  ;;  %s101_s21 = smov [#allocation2]   ;;  %s64_s25 = sshll.u32 %s182_s3, 4  ;;  %s65_s25 = int_to_ptr.hbm [resolvable:$true] %s64_s25 }
   0x8   :  { %39 = vmatpush.msra.mxu0 %v28_v3  ;;  %v24_v7 = vld [vmem:[%s180_s1 + $0x40] sm:$0xff]  ;;  %v23_v8 = vld [vmem:[%s180_s1 + $0x38] sm:$0xff]  ;;  %v22_v9 = vld [vmem:[%s180_s1 + $0x30] sm:$0xff]  ;;  %s62_s22 = sshll.u32 %s101_s21, 4  ;;  %s63_s22 = int_to_ptr.vmem [resolvable:$true] %s62_s22 }
   0x9   :  { %v21_v10 = vld [vmem:[%s180_s1 + $0x28] sm:$0xff]  ;;  %v20_v11 = vld [vmem:[%s180_s1 + $0x20] sm:$0xff]  ;;  %v19_v12 = vld [vmem:[%s180_s1 + $0x18] sm:$0xff] }
   0xa   :  { %40 = vmatpush.msra.mxu0 %v27_v4  ;;  %v18_v13 = vld [vmem:[%s180_s1 + $0x10] sm:$0xff]  ;;  %v17_v14 = vld [vmem:[%s180_s1 + $0x8] sm:$0xff]  ;;  %v16_v15 = vld [vmem:[%s180_s1] sm:$0xff] }
   0xb   :  { %v15_v16 = vld [vmem:[%s179_s0] sm:$0xff] }
   0xc   :  { %41 = vmatpush.msra.mxu0 %v26_v5  ;;  %v74_v17 = vld [vmem:[%s181_s2] ss:$0 sm:$0xff] }
   0xe   :  { %42 = vmatpush.msra.mxu0 %v25_v6 }
  0x10   :  { %43 = vmatpush.msra.mxu0 %v24_v7 }
  0x12   :  { %44 = vmatpush.msra.mxu0 %v23_v8 }
  0x14   :  { %45 = vmatpush.msra.mxu0 %v22_v9 }
  0x16   :  { %46 = vmatpush.msra.mxu0 %v21_v10 }
  0x18   :  { %47 = vmatpush.msra.mxu0 %v20_v11 }
  0x1a   :  { %48 = vmatpush.msra.mxu0 %v19_v12 }
  0x1c   :  { %49 = vmatpush.msra.mxu0 %v18_v13 }
  0x1e   :  { %50 = vmatpush.msra.mxu0 %v17_v14 }
  0x20   :  { %51 = vmatpush.msra.mxu0 %v16_v15 }
  0x21   :  { %52 = vmatmul.f32.vlgmr.msra.gmra.mxu0 %v15_v16 }
  0x9e   :  { %v53_v18 = vpop.f32.mrf.mxu0 }
  0x9f   :  { %v54_v19 = vadd.f32 %v74_v17, %v53_v18 }
  0xa1   :  { %56 = vst [vmem:[#allocation2] sm:$0xff] %v54_v19 }
  0xa2   :  { %67 = dma.vmem_to_hbm [thread:$0]  %s63_s22, 128, %s65_s25, [#allocation3]  }
  0xa3   :  { %99 = dma.done.wait [#allocation3], 128  }
  0xa4   :  { %100 = vsyncadd [#allocation3], 4294967168 }
  0xa5   :  { %72 = vsyncpa [#allocation3], 1 }

</bundles_post_ra>
